<compile_context>
chip_gen: v6e
topology: v6e:2x2x1
jax: 0.10.0
libtpu: 0.0.40
codegen_flags: <defaults>
</compile_context>

<pallas_src>
from functools import partial

import jax
import jax.numpy as jnp
from jax.experimental import pallas as pl
from jax.experimental.pallas import tpu as pltpu


def _recip(x):
    # EUP approximate reciprocal + one Newton step: divide leaves the VPU,
    # relative error ~1e-7 (comfortably inside the 1e-4 reference tolerance).
    r = pl.reciprocal(x, approx=True)
    return r * (2.0 - x * r)


def _center_attention_kernel(x_ref, wq_ref, wk_ref, wv_ref, wo_ref, bo_ref,
                             a_spec_ref, sel_ih_ref, sel_hi_ref, o_ref,
                             *, scale, compute_dtype):
    f32 = jnp.float32
    cd = compute_dtype
    block_b, n, d_model = x_ref.shape
    inner = wq_ref.shape[1]
    heads = sel_ih_ref.shape[1]
    median = n // 2

    wq = wq_ref[...].astype(cd)
    wk = wk_ref[...].astype(cd)
    wv = wv_ref[...].astype(cd)
    wo = wo_ref[...].astype(cd)
    bo = bo_ref[...].astype(f32)                       # (1, D)
    a_spec = a_spec_ref[...].astype(cd)                # (N, N) = scale*WqsWks^T
    sel_ih = sel_ih_ref[...].astype(cd)                # (inner, heads) 0/1
    sel_hi = sel_hi_ref[...].astype(cd)                # (heads, inner) 0/1

    x_blk = x_ref[...].astype(cd)                      # (bb, N, D)
    x2d = x_blk.reshape(block_b * n, d_model)          # sublane-dense

    # ---- spatial branch: whole batch block per matmul ----------------------
    k2d = jnp.dot(x2d, wk, preferred_element_type=f32)          # (bb*N, inner)
    v2d = jnp.dot(x2d, wv, preferred_element_type=f32)          # (bb*N, inner)

    # Center-token query rows for the whole block; softmax scale folded in.
    xc = x_blk[:, median:median + 1, :].reshape(block_b, d_model)
    q_rows = jnp.dot(xc, wq, preferred_element_type=f32) * scale   # (bb, inner)

    # scores[b, t, h] = <q_b head h, k_{b,t} head h> -- one full-width matmul.
    k3 = k2d.reshape(block_b, n, inner)
    kq = (k3 * q_rows[:, None, :]).astype(cd)                      # (bb, N, inner)
    scores = jnp.dot(kq.reshape(block_b * n, inner), sel_ih,
                     preferred_element_type=f32).reshape(block_b, n, heads)
    scores = scores - jnp.max(scores, axis=1, keepdims=True)
    p = jnp.exp(scores)
    p = p * _recip(jnp.sum(p, axis=1, keepdims=True))              # (bb, N, heads)

    # Attention output for the single (center) query row of every element,
    # then the output projection -- all batched.
    p_full = jnp.dot(p.reshape(block_b * n, heads).astype(cd), sel_hi,
                     preferred_element_type=f32)                   # (bb*N, inner)
    out_rows = jnp.sum((p_full * v2d).reshape(block_b, n, inner), axis=1)
    spatial_rows = jnp.dot(out_rows.astype(cd), wo,
                           preferred_element_type=f32) + bo        # (bb, D)

    # ---- spectral branch: spec_w[b] = row-softmax(x_b^T a_spec x_b) --------
    xt = jnp.swapaxes(x_blk, 1, 2)                                 # (bb, D, N): one transpose/step
    w = jnp.dot(xt.reshape(block_b * d_model, n), a_spec,
                preferred_element_type=f32)                        # (bb*D, N) = x^T a_spec
    s = jnp.einsum('bdn,bne->bde',
                   w.reshape(block_b, d_model, n).astype(cd), x_blk,
                   preferred_element_type=f32)                     # (bb, D, D)
    s = s - jnp.max(s, axis=-1, keepdims=True)
    e_s = jnp.exp(s)
    spec_w = e_s * _recip(jnp.sum(e_s, axis=-1, keepdims=True))    # (bb, D, D)

    # All N output rows per element are provably identical -> emit one row.
    row = jnp.einsum('bqd,bde->bqe', spatial_rows[:, None, :].astype(cd),
                     spec_w.astype(cd), preferred_element_type=f32)  # (bb, 1, D)
    o_ref[...] = row.astype(o_ref.dtype)


def _head_selectors(heads, dim_head, dtype=jnp.float32):
    inner = heads * dim_head
    lane = jnp.arange(inner)[:, None]
    head = jnp.arange(heads)[None, :]
    sel_ih = ((lane >= head * dim_head)
              & (lane < (head + 1) * dim_head)).astype(dtype)   # (inner, heads)
    return sel_ih, sel_ih.T                                     # (heads, inner)


def _default_block_b(batch, n, d, itemsize):
    """Keep >= 8 grid steps when the batch allows (>= 4 per TensorCore on v7x)
    and keep the double-buffered x block in the low-MiB range."""
    target = max(1, batch // 8)
    max_by_mem = max(1, (2 * 1024 * 1024) // max(1, 2 * n * d * itemsize))
    target = max(1, min(target, max_by_mem, batch))
    for cand in range(target, 0, -1):
        if batch % cand == 0:
            return cand
    return 1


def _vmem_limit_bytes(est_bytes):
    """Generation-aware scoped-VMEM request: ~75% of physical VMEM as ceiling
    (48 MiB on v7x, 96 MiB on v5e/v6e), 32 MiB floor."""
    try:
        cap = int(getattr(pltpu.get_tpu_info(), "vmem_capacity_bytes",
                          64 * 1024 * 1024))
    except Exception:        # info unavailable -> conservative v7x assumption
        cap = 64 * 1024 * 1024
    ceiling = (cap * 3) // 4
    return int(min(max(2 * est_bytes, 32 * 1024 * 1024), ceiling))


def center_attention(x, params, heads, dim_head, *, block_b=None,
                     compute_dtype=None):
    """CenterAttention forward.

    compute_dtype: dtype of the MXU operands inside the kernel.  Defaults to
    x.dtype (exact f32 path).  Pass jnp.bfloat16 on v5e/v6e/v7x for the fast
    MXU path in production; softmax math and accumulation stay f32 either way.
    """
    wq, wk, wv, wo, bo, wqs, wks = params
    B, N, D = x.shape
    inner = heads * dim_head
    scale = dim_head ** (-0.5)
    if compute_dtype is None:
        compute_dtype = x.dtype
    if block_b is None:
        block_b = _default_block_b(B, N, D, jnp.dtype(x.dtype).itemsize)
    assert B % block_b == 0, (B, block_b)
    grid_b = B // block_b

    # Batch-invariant work hoisted out of the kernel (previously recomputed
    # every grid step): combined spectral weight and 0/1 head selectors.
    a_spec = (wqs @ wks.T) * scale                   # (N, N)
    sel_ih, sel_hi = _head_selectors(heads, dim_head)

    kernel = partial(_center_attention_kernel, scale=scale,
                     compute_dtype=compute_dtype)

    def resident(shape):
        # Constant index_map: block index never changes across grid steps, so
        # the weight stays resident in VMEM (no per-step re-DMA).  On v7x one
        # could additionally pass pipeline_mode=pl.Buffered(1) to drop the
        # second buffer; left at the default here for portability.
        zeros = (0,) * len(shape)
        return pl.BlockSpec(shape, lambda b: zeros)

    # Scoped-VMEM estimate: weights at f32 itemsize, x/out blocks double
    # buffered, resident blocks counted twice (default double-buffering).
    f32b = 4
    cdb = jnp.dtype(compute_dtype).itemsize
    xb = jnp.dtype(x.dtype).itemsize
    resident_bytes = 2 * f32b * (3 * D * inner + inner * D + D + N * N
                                 + 2 * inner * heads)
    io_bytes = 2 * xb * (block_b * N * D + block_b * D)
    interm_bytes = (cdb * block_b * (N * D + 2 * N * inner + D * N)
                    + f32b * block_b * (3 * N * inner + N * heads + 2 * D * N
                                        + 2 * D * D + 2 * inner + 3 * D))
    vmem_limit = _vmem_limit_bytes(resident_bytes + io_bytes + interm_bytes)

    out_center = pl.pallas_call(
        kernel,
        out_shape=jax.ShapeDtypeStruct((B, 1, D), x.dtype),
        grid=(grid_b,),
        in_specs=[
            pl.BlockSpec((block_b, N, D), lambda b: (b, 0, 0)),   # x block
            resident((D, inner)),                                 # Wq
            resident((D, inner)),                                 # Wk
            resident((D, inner)),                                 # Wv
            resident((inner, D)),                                 # Wo
            resident((1, D)),                                     # bo
            resident((N, N)),                                     # a_spec
            resident((inner, heads)),                             # sel_ih
            resident((heads, inner)),                             # sel_hi
        ],
        out_specs=pl.BlockSpec((block_b, 1, D), lambda b: (b, 0, 0)),
        compiler_params=pltpu.CompilerParams(
            dimension_semantics=("parallel",),
            vmem_limit_bytes=vmem_limit,
        ),
    )(x, wq, wk, wv, wo, bo, a_spec, sel_ih, sel_hi)

    # Center-query structure: every row of the module's (B, N, D) output is
    # identical, so the kernel writes one row per element and the broadcast
    # back happens here in XLA (N x less kernel HBM writeback).
    return jnp.broadcast_to(out_center, (B, N, D))


def center_attention_ref(x, params, heads, dim_head):
    """Pure-JAX reference mirroring the PyTorch forward exactly."""
    wq, wk, wv, wo, bo, wqs, wks = params
    B, N, D = x.shape
    scale = dim_head ** (-0.5)
    median_idx = N // 2
    x_center = jnp.broadcast_to(x[:, median_idx:median_idx + 1, :], (B, N, D))
    q = x_center @ wq
    k = x @ wk
    v = x @ wv
    split = lambda t: t.reshape(B, N, heads, dim_head).transpose(0, 2, 1, 3)
    q, k, v = split(q), split(k), split(v)
    attn = jax.nn.softmax(jnp.einsum("bhnd,bhmd->bhnm", q, k) * scale, axis=-1)
    out = jnp.einsum("bhnm,bhmd->bhnd", attn, v)
    out = out.transpose(0, 2, 1, 3).reshape(B, N, heads * dim_head)
    spatial_out = out @ wo + bo[0]
    x_t = jnp.swapaxes(x, -2, -1)                    # (B, D, N)
    q_spec = x_t @ wqs
    k_spec = x_t @ wks
    spec_w = jax.nn.softmax(
        jnp.einsum("bdn,ben->bde", q_spec, k_spec) * scale, axis=-1)
    return jnp.einsum("bnd,bde->bne", spatial_out, spec_w)


def _make_inputs(key, B, N, D, heads, dim_head):
    inner = heads * dim_head
    ks = jax.random.split(key, 8)
    x   = jax.random.normal(ks[0], (B, N, D), jnp.float32)
    wq  = jax.random.normal(ks[1], (D, inner), jnp.float32) * 0.1
    wk  = jax.random.normal(ks[2], (D, inner), jnp.float32) * 0.1
    wv  = jax.random.normal(ks[3], (D, inner), jnp.float32) * 0.1
    wo  = jax.random.normal(ks[4], (inner, D), jnp.float32) * 0.1
    bo  = jax.random.normal(ks[5], (1, D), jnp.float32) * 0.1
    wqs = jax.random.normal(ks[6], (N, N), jnp.float32) * 0.1
    wks = jax.random.normal(ks[7], (N, N), jnp.float32) * 0.1
    return x, (wq, wk, wv, wo, bo, wqs, wks)


if __name__ == "__main__":
    heads, dim_head = 4, 8
    key = jax.random.PRNGKey(0)
    k1, k2, k3 = jax.random.split(key, 3)

    # Test 1: B=2 -> block_b=1, grid=(2,). Exact f32 path.
    x, params = _make_inputs(k1, B=2, N=8, D=32, heads=heads, dim_head=dim_head)
    out = jax.block_until_ready(center_attention(x, params, heads, dim_head))
    ref = center_attention_ref(x, params, heads, dim_head)
    assert out.shape == x.shape
    assert jnp.allclose(out, ref, atol=1e-4, rtol=1e-4)

    # Test 2: B=8 with explicit block_b=2 -> grid=(4,): exercises the batched
    # (block_b > 1) path with pipelining depth >= 4.
    x2, params2 = _make_inputs(k2, B=8, N=8, D=32, heads=heads, dim_head=dim_head)
    out2 = jax.block_until_ready(
        center_attention(x2, params2, heads, dim_head, block_b=2))
    ref2 = center_attention_ref(x2, params2, heads, dim_head)
    assert out2.shape == x2.shape
    assert jnp.allclose(out2, ref2, atol=1e-4, rtol=1e-4)

    # Test 3: production bf16 MXU-operand path (softmax/accumulation stay f32).
    x3, params3 = _make_inputs(k3, B=4, N=8, D=32, heads=heads, dim_head=dim_head)
    out3 = jax.block_until_ready(
        center_attention(x3, params3, heads, dim_head,
                         compute_dtype=jnp.bfloat16))
    ref3 = center_attention_ref(x3, params3, heads, dim_head)
    assert out3.shape == x3.shape
    assert jnp.allclose(out3, ref3, atol=2e-2, rtol=2e-2)

    print("KERNEL_OK")
</pallas_src>

<mosaic_0001>
module attributes {stable_mosaic.version = 11 : i64} {
  func.func @_center_attention_kernel(%arg0: i32, %arg1: memref<1x8x32xf32, #tpu.memory_space<vmem>>, %arg2: memref<32x32xf32, #tpu.memory_space<vmem>>, %arg3: memref<32x32xf32, #tpu.memory_space<vmem>>, %arg4: memref<32x32xf32, #tpu.memory_space<vmem>>, %arg5: memref<32x32xf32, #tpu.memory_space<vmem>>, %arg6: memref<1x32xf32, #tpu.memory_space<vmem>>, %arg7: memref<8x8xf32, #tpu.memory_space<vmem>>, %arg8: memref<32x4xf32, #tpu.memory_space<vmem>>, %arg9: memref<4x32xf32, #tpu.memory_space<vmem>>, %arg10: memref<1x1x32xf32, #tpu.memory_space<vmem>>) attributes {dimension_semantics = [#tpu.dimension_semantics<parallel>], iteration_bounds = array<i64: 2>, scalar_prefetch = 0 : i64, scratch_operands = 0 : i64, tpu.core_type = #tpu.core_type<tc>, window_params = [{transform_indices = @transform_0, window_bounds = array<i64: 1, 8, 32>}, {pipeline_mode = #tpu.pipeline_mode<synchronous>, transform_indices = @transform_1, window_bounds = array<i64: 32, 32>}, {pipeline_mode = #tpu.pipeline_mode<synchronous>, transform_indices = @transform_2, window_bounds = array<i64: 32, 32>}, {pipeline_mode = #tpu.pipeline_mode<synchronous>, transform_indices = @transform_3, window_bounds = array<i64: 32, 32>}, {pipeline_mode = #tpu.pipeline_mode<synchronous>, transform_indices = @transform_4, window_bounds = array<i64: 32, 32>}, {pipeline_mode = #tpu.pipeline_mode<synchronous>, transform_indices = @transform_5, window_bounds = array<i64: 1, 32>}, {pipeline_mode = #tpu.pipeline_mode<synchronous>, transform_indices = @transform_6, window_bounds = array<i64: 8, 8>}, {pipeline_mode = #tpu.pipeline_mode<synchronous>, transform_indices = @transform_7, window_bounds = array<i64: 32, 4>}, {pipeline_mode = #tpu.pipeline_mode<synchronous>, transform_indices = @transform_8, window_bounds = array<i64: 4, 32>}, {transform_indices = @transform_9, window_bounds = array<i64: 1, 1, 32>}]} {
    %c0 = arith.constant 0 : index
    %c0_0 = arith.constant 0 : index
    %0 = vector.load %arg2[%c0, %c0_0] : memref<32x32xf32, #tpu.memory_space<vmem>>, vector<32x32xf32>
    %c0_1 = arith.constant 0 : index
    %c0_2 = arith.constant 0 : index
    %1 = vector.load %arg3[%c0_1, %c0_2] : memref<32x32xf32, #tpu.memory_space<vmem>>, vector<32x32xf32>
    %c0_3 = arith.constant 0 : index
    %c0_4 = arith.constant 0 : index
    %2 = vector.load %arg4[%c0_3, %c0_4] : memref<32x32xf32, #tpu.memory_space<vmem>>, vector<32x32xf32>
    %c0_5 = arith.constant 0 : index
    %c0_6 = arith.constant 0 : index
    %3 = vector.load %arg5[%c0_5, %c0_6] : memref<32x32xf32, #tpu.memory_space<vmem>>, vector<32x32xf32>
    %c0_7 = arith.constant 0 : index
    %c0_8 = arith.constant 0 : index
    %4 = vector.load %arg6[%c0_7, %c0_8] : memref<1x32xf32, #tpu.memory_space<vmem>>, vector<1x32xf32>
    %c0_9 = arith.constant 0 : index
    %c0_10 = arith.constant 0 : index
    %5 = vector.load %arg7[%c0_9, %c0_10] : memref<8x8xf32, #tpu.memory_space<vmem>>, vector<8x8xf32>
    %c0_11 = arith.constant 0 : index
    %c0_12 = arith.constant 0 : index
    %6 = vector.load %arg8[%c0_11, %c0_12] : memref<32x4xf32, #tpu.memory_space<vmem>>, vector<32x4xf32>
    %c0_13 = arith.constant 0 : index
    %c0_14 = arith.constant 0 : index
    %7 = vector.load %arg9[%c0_13, %c0_14] : memref<4x32xf32, #tpu.memory_space<vmem>>, vector<4x32xf32>
    %c0_15 = arith.constant 0 : index
    %c0_16 = arith.constant 0 : index
    %c0_17 = arith.constant 0 : index
    %8 = vector.load %arg1[%c0_15, %c0_16, %c0_17] : memref<1x8x32xf32, #tpu.memory_space<vmem>>, vector<1x8x32xf32>
    %9 = vector.shape_cast %8 : vector<1x8x32xf32> to vector<8x32xf32>
    %cst = arith.constant dense<0.000000e+00> : vector<8x32xf32>
    %10 = tpu.matmul %9, %1, %cst {dimension_numbers = #tpu.dot_dimension_numbers<[1], [0], [0], [1], [0, 0, 1, 1], [], []>} : vector<8x32xf32>, vector<32x32xf32>, vector<8x32xf32> -> vector<8x32xf32>
    %cst_18 = arith.constant dense<0.000000e+00> : vector<8x32xf32>
    %11 = tpu.matmul %9, %2, %cst_18 {dimension_numbers = #tpu.dot_dimension_numbers<[1], [0], [0], [1], [0, 0, 1, 1], [], []>} : vector<8x32xf32>, vector<32x32xf32>, vector<8x32xf32> -> vector<8x32xf32>
    %12 = vector.extract_strided_slice %8 {offsets = [0, 4, 0], sizes = [1, 1, 32], strides = [1, 1, 1]} : vector<1x8x32xf32> to vector<1x1x32xf32>
    %13 = vector.shape_cast %12 : vector<1x1x32xf32> to vector<1x32xf32>
    %cst_19 = arith.constant dense<0.000000e+00> : vector<1x32xf32>
    %14 = tpu.matmul %13, %0, %cst_19 {dimension_numbers = #tpu.dot_dimension_numbers<[1], [0], [0], [1], [0, 0, 1, 1], [], []>} : vector<1x32xf32>, vector<32x32xf32>, vector<1x32xf32> -> vector<1x32xf32>
    %cst_20 = arith.constant 0.353553385 : f32
    %15 = vector.broadcast %cst_20 : f32 to vector<1x32xf32>
    %16 = arith.mulf %14, %15 : vector<1x32xf32>
    %17 = vector.shape_cast %10 : vector<8x32xf32> to vector<1x8x32xf32>
    %18 = vector.shape_cast %16 : vector<1x32xf32> to vector<1x1x32xf32>
    %19 = vector.broadcast %18 : vector<1x1x32xf32> to vector<1x8x32xf32>
    %20 = arith.mulf %17, %19 : vector<1x8x32xf32>
    %21 = vector.shape_cast %20 : vector<1x8x32xf32> to vector<8x32xf32>
    %cst_21 = arith.constant dense<0.000000e+00> : vector<8x4xf32>
    %22 = tpu.matmul %21, %6, %cst_21 {dimension_numbers = #tpu.dot_dimension_numbers<[1], [0], [0], [1], [0, 0, 1, 1], [], []>} : vector<8x32xf32>, vector<32x4xf32>, vector<8x4xf32> -> vector<8x4xf32>
    %23 = vector.shape_cast %22 : vector<8x4xf32> to vector<1x8x4xf32>
    %cst_22 = arith.constant dense<0xFF800000> : vector<1x4xf32>
    %24 = vector.multi_reduction <maximumf>, %23, %cst_22 [1] : vector<1x8x4xf32> to vector<1x4xf32>
    %25 = vector.shape_cast %24 : vector<1x4xf32> to vector<1x1x4xf32>
    %26 = vector.broadcast %25 : vector<1x1x4xf32> to vector<1x8x4xf32>
    %27 = arith.subf %23, %26 : vector<1x8x4xf32>
    %28 = math.exp %27 : vector<1x8x4xf32>
    %cst_23 = arith.constant dense<0.000000e+00> : vector<1x4xf32>
    %29 = vector.multi_reduction <add>, %28, %cst_23 [1] : vector<1x8x4xf32> to vector<1x4xf32>
    %30 = vector.shape_cast %29 : vector<1x4xf32> to vector<1x1x4xf32>
    %31 = tpu.reciprocal %30 {approx = true} : vector<1x1x4xf32> -> vector<1x1x4xf32>
    %32 = arith.mulf %30, %31 : vector<1x1x4xf32>
    %cst_24 = arith.constant 2.000000e+00 : f32
    %33 = vector.broadcast %cst_24 : f32 to vector<1x1x4xf32>
    %34 = arith.subf %33, %32 : vector<1x1x4xf32>
    %35 = arith.mulf %31, %34 : vector<1x1x4xf32>
    %36 = vector.broadcast %35 : vector<1x1x4xf32> to vector<1x8x4xf32>
    %37 = arith.mulf %28, %36 : vector<1x8x4xf32>
    %38 = vector.shape_cast %37 : vector<1x8x4xf32> to vector<8x4xf32>
    %cst_25 = arith.constant dense<0.000000e+00> : vector<8x32xf32>
    %39 = tpu.matmul %38, %7, %cst_25 {dimension_numbers = #tpu.dot_dimension_numbers<[1], [0], [0], [1], [0, 0, 1, 1], [], []>} : vector<8x4xf32>, vector<4x32xf32>, vector<8x32xf32> -> vector<8x32xf32>
    %40 = arith.mulf %39, %11 : vector<8x32xf32>
    %41 = vector.shape_cast %40 : vector<8x32xf32> to vector<1x8x32xf32>
    %cst_26 = arith.constant dense<0.000000e+00> : vector<1x32xf32>
    %42 = vector.multi_reduction <add>, %41, %cst_26 [1] : vector<1x8x32xf32> to vector<1x32xf32>
    %cst_27 = arith.constant dense<0.000000e+00> : vector<1x32xf32>
    %43 = tpu.matmul %42, %3, %cst_27 {dimension_numbers = #tpu.dot_dimension_numbers<[1], [0], [0], [1], [0, 0, 1, 1], [], []>} : vector<1x32xf32>, vector<32x32xf32>, vector<1x32xf32> -> vector<1x32xf32>
    %44 = arith.addf %43, %4 : vector<1x32xf32>
    %45 = tpu.transpose %8, [0, 2, 1] : vector<1x8x32xf32> -> vector<1x32x8xf32>
    %46 = vector.shape_cast %45 : vector<1x32x8xf32> to vector<32x8xf32>
    %cst_28 = arith.constant dense<0.000000e+00> : vector<32x8xf32>
    %47 = tpu.matmul %46, %5, %cst_28 {dimension_numbers = #tpu.dot_dimension_numbers<[1], [0], [0], [1], [0, 0, 1, 1], [], []>} : vector<32x8xf32>, vector<8x8xf32>, vector<32x8xf32> -> vector<32x8xf32>
    %48 = vector.shape_cast %47 : vector<32x8xf32> to vector<1x32x8xf32>
    "tpu.trace_start"() <{level = 10 : i32, message = "bdn,bne->bde"}> : () -> ()
    %cst_29 = arith.constant dense<0.000000e+00> : vector<1x32x32xf32>
    %49 = tpu.matmul %48, %8, %cst_29 {dimension_numbers = #tpu.dot_dimension_numbers<[2], [1], [1], [2], [0, 0, 0, 1, 1, 2], [0], [0]>} : vector<1x32x8xf32>, vector<1x8x32xf32>, vector<1x32x32xf32> -> vector<1x32x32xf32>
    "tpu.trace_stop"() : () -> ()
    %cst_30 = arith.constant dense<0xFF800000> : vector<1x32xf32>
    %50 = vector.multi_reduction <maximumf>, %49, %cst_30 [2] : vector<1x32x32xf32> to vector<1x32xf32>
    %51 = vector.shape_cast %50 : vector<1x32xf32> to vector<1x32x1xf32>
    %52 = vector.broadcast %51 : vector<1x32x1xf32> to vector<1x32x32xf32>
    %53 = arith.subf %49, %52 : vector<1x32x32xf32>
    %54 = math.exp %53 : vector<1x32x32xf32>
    %cst_31 = arith.constant dense<0.000000e+00> : vector<1x32xf32>
    %55 = vector.multi_reduction <add>, %54, %cst_31 [2] : vector<1x32x32xf32> to vector<1x32xf32>
    %56 = vector.shape_cast %55 : vector<1x32xf32> to vector<1x32x1xf32>
    %57 = tpu.reciprocal %56 {approx = true} : vector<1x32x1xf32> -> vector<1x32x1xf32>
    %58 = arith.mulf %56, %57 : vector<1x32x1xf32>
    %cst_32 = arith.constant 2.000000e+00 : f32
    %59 = vector.broadcast %cst_32 : f32 to vector<1x32x1xf32>
    %60 = arith.subf %59, %58 : vector<1x32x1xf32>
    %61 = arith.mulf %57, %60 : vector<1x32x1xf32>
    %62 = vector.broadcast %61 : vector<1x32x1xf32> to vector<1x32x32xf32>
    %63 = arith.mulf %54, %62 : vector<1x32x32xf32>
    %64 = vector.shape_cast %44 : vector<1x32xf32> to vector<1x1x32xf32>
    "tpu.trace_start"() <{level = 10 : i32, message = "bqd,bde->bqe"}> : () -> ()
    %cst_33 = arith.constant dense<0.000000e+00> : vector<1x1x32xf32>
    %65 = tpu.matmul %64, %63, %cst_33 {dimension_numbers = #tpu.dot_dimension_numbers<[2], [1], [1], [2], [0, 0, 0, 1, 1, 2], [0], [0]>} : vector<1x1x32xf32>, vector<1x32x32xf32>, vector<1x1x32xf32> -> vector<1x1x32xf32>
    "tpu.trace_stop"() : () -> ()
    %c0_34 = arith.constant 0 : index
    %c0_35 = arith.constant 0 : index
    %c0_36 = arith.constant 0 : index
    %66 = vector.load %arg10[%c0_34, %c0_35, %c0_36] : memref<1x1x32xf32, #tpu.memory_space<vmem>>, vector<1x1x32xf32>
    tpu.vector_store %arg10[%c0_34, %c0_35, %c0_36], %65 {strides = array<i32>} : memref<1x1x32xf32, #tpu.memory_space<vmem>>, vector<1x1x32xf32>,
    return
  }
  func.func @transform_0(%arg0: i32) -> (i32, i32, i32) {
    %c0_i32 = arith.constant 0 : i32
    %c0_i32_0 = arith.constant 0 : i32
    %c0_i32_1 = arith.constant 0 : i32
    return %arg0, %c0_i32, %c0_i32_0 : i32, i32, i32
  }
  func.func @transform_1(%arg0: i32) -> (i32, i32) {
    %c0_i32 = arith.constant 0 : i32
    %c0_i32_0 = arith.constant 0 : i32
    %c0_i32_1 = arith.constant 0 : i32
    return %c0_i32, %c0_i32_0 : i32, i32
  }
  func.func @transform_2(%arg0: i32) -> (i32, i32) {
    %c0_i32 = arith.constant 0 : i32
    %c0_i32_0 = arith.constant 0 : i32
    %c0_i32_1 = arith.constant 0 : i32
    return %c0_i32, %c0_i32_0 : i32, i32
  }
  func.func @transform_3(%arg0: i32) -> (i32, i32) {
    %c0_i32 = arith.constant 0 : i32
    %c0_i32_0 = arith.constant 0 : i32
    %c0_i32_1 = arith.constant 0 : i32
    return %c0_i32, %c0_i32_0 : i32, i32
  }
  func.func @transform_4(%arg0: i32) -> (i32, i32) {
    %c0_i32 = arith.constant 0 : i32
    %c0_i32_0 = arith.constant 0 : i32
    %c0_i32_1 = arith.constant 0 : i32
    return %c0_i32, %c0_i32_0 : i32, i32
  }
  func.func @transform_5(%arg0: i32) -> (i32, i32) {
    %c0_i32 = arith.constant 0 : i32
    %c0_i32_0 = arith.constant 0 : i32
    %c0_i32_1 = arith.constant 0 : i32
    return %c0_i32, %c0_i32_0 : i32, i32
  }
  func.func @transform_6(%arg0: i32) -> (i32, i32) {
    %c0_i32 = arith.constant 0 : i32
    %c0_i32_0 = arith.constant 0 : i32
    %c0_i32_1 = arith.constant 0 : i32
    return %c0_i32, %c0_i32_0 : i32, i32
  }
  func.func @transform_7(%arg0: i32) -> (i32, i32) {
    %c0_i32 = arith.constant 0 : i32
    %c0_i32_0 = arith.constant 0 : i32
    %c0_i32_1 = arith.constant 0 : i32
    return %c0_i32, %c0_i32_0 : i32, i32
  }
  func.func @transform_8(%arg0: i32) -> (i32, i32) {
    %c0_i32 = arith.constant 0 : i32
    %c0_i32_0 = arith.constant 0 : i32
    %c0_i32_1 = arith.constant 0 : i32
    return %c0_i32, %c0_i32_0 : i32, i32
  }
  func.func @transform_9(%arg0: i32) -> (i32, i32, i32) {
    %c0_i32 = arith.constant 0 : i32
    %c0_i32_0 = arith.constant 0 : i32
    %c0_i32_1 = arith.constant 0 : i32
    return %arg0, %c0_i32, %c0_i32_0 : i32, i32, i32
  }
}

</mosaic_0001>

<bundles_post_ra>
// kernel: tpu_custom_call.1
= control target key start
LH: loop header
LB: loop body
LE: loop exit
PB: predicated region body
PF: predicated region fallthrough
CT: control target
= control target key end

     0   :  { %s2241_s0 = inlined_call_operand.hbm [shape: f32[2,8,32], index: 0, kind: input, shape index: {}]   ;;  %s2242_s1 = inlined_call_operand.vmem [shape: f32[32,32], index: 1, kind: input, shape index: {}]   ;;  %s2243_s2 = inlined_call_operand.hbm [shape: f32[32,32], index: 2, kind: input, shape index: {}]   ;;  %s2244_s3 = inlined_call_operand.hbm [shape: f32[32,32], index: 3, kind: input, shape index: {}]   ;;  %s2245_s4 = inlined_call_operand.hbm [shape: f32[32,32], index: 4, kind: input, shape index: {}]   ;;  %s2246_s5 = inlined_call_operand.hbm [shape: f32[1,32], index: 5, kind: input, shape index: {}]   ;;  %s2247_s6 = inlined_call_operand.vmem [shape: f32[8,8], index: 6, kind: input, shape index: {}]   ;;  %s2248_s7 = inlined_call_operand.vmem [shape: f32[32,4], index: 7, kind: input, shape index: {}]   ;;  %s2249_s8 = inlined_call_operand.vmem [shape: f32[4,32], index: 8, kind: input, shape index: {}]   ;;  %s2250_s9 = inlined_call_operand.hbm [shape: f32[2,1,32], index: 9, kind: output, shape index: {}]  }
   0x1   :  { %2255 = sst [smem:[#allocation16_spill]] %s2243_s2 }
   0x2   :  { %2256 = sst [smem:[#allocation17_spill]] %s2244_s3 }
   0x3   :  { %2257 = sst [smem:[#allocation18_spill]] %s2245_s4 }
   0x4   :  { %2258 = sst [smem:[#allocation19_spill]] %s2246_s5 }
   0x5   :  { %14 = vsyncpa [#allocation3], 0 }
   0x6   :  { %16 = vsyncpa [#allocation3 + $0x1], 0 }
   0x7   :  { %17 = vsyncpa [#allocation6], 0 }
   0x8   :  { %18 = vsyncpa [#allocation9], 0 }
   0x9   :  { %19 = vsyncpa [#allocation4], 0 }
   0xa   :  { %21 = vsyncpa [#allocation4 + $0x1], 0  ;;  %s1919_s30 = smov 0   ;;  %s1921_s10 = smov 0  }
   0xb   :  { %s1923_s11 = smov 0   ;;  %s1925_s12 = smov 0  }
   0xc LB: > { %s1859_s13 = smov [#allocation5]   ;;  %s1940_s15 = sadd.s32 4294967295, %s1857_s12   ;;  %s1857_s12 = sphi %s1925_s12, %s2282_s12   ;;  %s1853_s11 = sphi %s1923_s11, %s2281_s11   ;;  %s1849_s10 = sphi %s1921_s10, %s2280_s10   ;;  %s1845_s30 = sphi %s1919_s30, %s2279_s30  }
   0xd   : > { %s267_s14 = sshll.u32 %s1859_s13, 4  ;;  %p1380_p0 = scmp.ge.s32.totalorder %s1857_s12, 1  ;;  %s268_s14 = int_to_ptr.vmem [resolvable:$true] %s267_s14 }
   0xe   : > { %p2251_p1 = scmp.eq.s32.totalorder %s1940_s15, 0  ;;  %p252_p2 = scmp.lt.s32.totalorder %s1857_s12, 3 }
   0xf   : > { %s1860_s17 = smov [#allocation8]   ;;  %s1861_s20 = smov [#allocation7]  }
  0x10   : > { %p1945_p3 = pnand %p1380_p0, %p252_p2  ;;  %s293_s18 = sshll.u32 %s1860_s17, 4  ;;  %s1958_s18 = int_to_ptr.vmem [resolvable:$true] %s293_s18 }
  0x11   : > { %s280_s21 = sshll.u32 %s1861_s20, 4  ;;  %s1664_s22 = scalar_lea.vmem %s268_s14, 512  ;;  %s1960_s21 = int_to_ptr.vmem [resolvable:$true] %s280_s21 }
  0x12   : > { %s2259_s16 = scalar_select %p1945_p3, 1, 0 }
  0x13   : > { %p1562_p5 = pneg %p1945_p3  ;;  %p1665_p8 = scmp.ne.s32.totalorder %s268_s14, %s1664_s22 }
  0x14   : > { %p1672_p11 = scmp.lt.s32.totalorder %s268_s14, %s268_s14  ;;  %p1673_p12 = scmp.lt.s32.totalorder %s1664_s22, %s1664_s22 }
  0x15   : > { %p1954_p6 = pnand %p1562_p5, %p2251_p1 }
  0x16   : > { %p1674_p13 = por %p1673_p12, %p1672_p11 }
  0x17   : > { %p1655_p7 = pneg %p1954_p6 }
  0x19   : > { %p1667_p9 = pnand %p1665_p8, %p1655_p7 }
  0x1b   : > { %p1668_p10 = pneg %p1667_p9 }
  0x1d   : > { %p1675_p0 = pnand %p1674_p13, %p1668_p10 }
  0x1f   : > { %1678 = shalt.err (!%p1675_p0)
}
  0x20   : > { %s1862_s23 = smov 128   ;;  %s1863_s24 = smov 8  }
  0x21   : > { %s2261_s2 = sld [smem:[#allocation16_spill]]  ;;  %s1690_s27 = scalar_lea.vmem %s1958_s18, 512 }
  0x22   : > { %p1691_p2 = scmp.ne.s32.totalorder %s1958_s18, %s1690_s27  ;;  %p1698_p9 = scmp.lt.s32.totalorder %s1958_s18, %s1958_s18 }
  0x23   : > { %p1699_p10 = scmp.lt.s32.totalorder %s1690_s27, %s1690_s27 }
  0x24   : > { %p1693_p5 = pnand %p1691_p2, %p1655_p7 }
  0x25   : > { %p1700_p11 = por %p1699_p10, %p1698_p9 }
  0x26   : > { %p1694_p8 = pneg %p1693_p5 }
  0x27   : > { %1565 = dma.hbm_to_vmem [thread:$0]  (!%p1954_p6), %s2261_s2, 512, %s268_s14, [#allocation6], %s1862_s23, %s1862_s23, %s1863_s24  }
  0x28   : > { %p1701_p12 = pnand %p1700_p11, %p1694_p8 }
  0x2a   : > { %1704 = shalt.err (!%p1701_p12)
}
  0x2b   : > { %s2262_s4 = sld [smem:[#allocation18_spill]]  ;;  %s1716_s13 = scalar_lea.vmem %s1960_s21, 512 }
  0x2c   : > { %p1717_p13 = scmp.ne.s32.totalorder %s1960_s21, %s1716_s13  ;;  %p1724_p5 = scmp.lt.s32.totalorder %s1960_s21, %s1960_s21 }
  0x2d   : > { %p1725_p8 = scmp.lt.s32.totalorder %s1716_s13, %s1716_s13 }
  0x2e   : > { %p1719_p0 = pnand %p1717_p13, %p1655_p7 }
  0x2f   : > { %p1726_p9 = por %p1725_p8, %p1724_p5 }
  0x30   : > { %p1720_p2 = pneg %p1719_p0 }
  0x31   : > { %1571 = dma.hbm_to_vmem [thread:$0]  (!%p1954_p6), %s2262_s4, 512, %s1958_s18, [#allocation9], %s1862_s23, %s1862_s23, %s1863_s24  }
  0x32   : > { %p1727_p10 = pnand %p1726_p9, %p1720_p2 }
  0x34   : > { %1730 = shalt.err (!%p1727_p10)
}
  0x35   : > { %s2263_s3 = sld [smem:[#allocation17_spill]]  ;;  %s1864_s18 = smov [#allocation10]  }
  0x36   : > { %s307_s20 = sshll.u32 %s1864_s18, 4  ;;  %s308_s20 = int_to_ptr.vmem [resolvable:$true] %s307_s20 }
  0x37   : > { %s1742_s22 = scalar_lea.vmem %s308_s20, 16  ;;  %s1749_s25 = scalar_lea.vmem %s308_s20, 32 }
  0x38   : > { %p1743_p11 = scmp.ne.s32.totalorder %s308_s20, %s1742_s22  ;;  %p1750_p0 = scmp.lt.s32.totalorder %s308_s20, %s308_s20 }
  0x39   : > { %p1751_p2 = scmp.lt.s32.totalorder %s1749_s25, %s1742_s22 }
  0x3a   : > { %p1745_p12 = pnand %p1743_p11, %p1655_p7 }
  0x3b   : > { %1568 = dma.hbm_to_vmem [thread:$0]  (!%p1954_p6), %s2263_s3, 512, %s1960_s21, [#allocation6], %s1862_s23, %s1862_s23, %s1863_s24  }
  0x3c   : > { %p1746_p13 = pneg %p1745_p12  ;;  %p1752_p5 = por %p1751_p2, %p1750_p0 }
  0x3e   : > { %p1753_p8 = pnand %p1752_p5, %p1746_p13 }
  0x40   : > { %1756 = shalt.err (!%p1753_p8)
}
  0x41   : > { %s2264_s5 = sld [smem:[#allocation19_spill]]  ;;  %s1379_s21 = sadd.s32 4294967294, %s1857_s12  }
  0x42   : > { %s2008_s19 = sadd.s32 1, %s1857_s12   ;;  %s34_s24 = sadd.s32 1, %s1853_s11 }
  0x43   : > { %s31_s23 = ssub.s32 %s1857_s12, %s2008_s19  ;;  %p41_p9 = scmp.ne.s32.totalorder %s1853_s11, %s1849_s10 }
  0x44   : > { %p32_p7 = scmp.eq.s32.totalorder %s31_s23, 0  ;;  %p42_p10 = scmp.eq.s32.totalorder %s1857_s12, 0 }
  0x45   : > { %p47_p11 = scmp.ne.s32.totalorder %s1849_s10, %s1845_s30  ;;  %p239_p13 = scmp.eq.s32.totalorder %s1940_s15, 1 }
  0x46   : > { %s2019_s28 = scalar_select %p32_p7, %s1853_s11, %s34_s24  }
  0x47   : > { %1574 = dma.hbm_to_vmem [thread:$0]  (!%p1954_p6), %s2264_s5, 16, %s308_s20, [#allocation9]  }
  0x48   : > { %p2021_p12 = por %p42_p10, %p41_p9  ;;  %p2027_p6 = por %p2251_p1, %p47_p11 }
  0x49   : > { %p245_p0 = scmp.eq.s32.totalorder %s1379_s21, 1  ;;  %p1587_p2 = scmp.lt.s32.totalorder %s1857_s12, 2 }
  0x4a   : > { %s2266_s13 = scalar_select %p2027_p6, 1, 0 }
  0x4b   : > { %s327_s14 = sand.u32 1, %s1853_s11   ;;  %p2034_p5 = por %p239_p13, %p41_p9 }
  0x4c   : > { %p2038_p8 = por %p245_p0, %p47_p11  ;;  %s1386_s20 = sshll.u32 %s327_s14, 3 }
  0x4d   : > { %s2267_s17 = scalar_select %p2034_p5, 1, 0 }
  0x4e   : > { %s2268_s18 = scalar_select %p2038_p8, 1, 0 }
  0x4f   : > { %s1387_s22 = sshll.u32 %s1857_s12, 7  ;;  %s331_s21 = scalar_lea.vmem [#allocation2], %s1386_s20 }
  0x50   : > { %s2046_s27 = scalar_lea.hbm %s2241_s0, %s1387_s22  ;;  %s338_s23 = sshll.u32 %s331_s21, 4  ;;  %s339_s23 = int_to_ptr.vmem [resolvable:$true] %s338_s23 }
  0x51   : > { %p2050_p7 = pnand %p1587_p2, %p2021_p12  ;;  %s328_s2 = scalar_lea.sflag [#allocation3], %s327_s14 }
  0x52   : > { %s1757_s3 = scalar_lea.hbm %s2046_s27, 128  ;;  %s1762_s26 = scalar_lea.hbm %s2241_s0, 256 }
  0x53   : > { %p1758_p9 = scmp.ne.s32.totalorder %s2046_s27, %s1757_s3  ;;  %p1759_p10 = pneg %p2050_p7 }
  0x54   : > { %p1763_p0 = scmp.lt.s32.totalorder %s2046_s27, %s2241_s0  ;;  %p1764_p12 = scmp.lt.s32.totalorder %s1762_s26, %s1757_s3 }
  0x55   : > { %p1760_p11 = pnand %p1759_p10, %p1758_p9 }
  0x56   : > { %p1765_p2 = por %p1764_p12, %p1763_p0 }
  0x57   : > { %p1761_p13 = pneg %p1760_p11 }
  0x59   : > { %p1766_p4 = pnand %p1765_p2, %p1761_p13 }
  0x5b   : > { %1769 = shalt.err (!%p1766_p4)
}
  0x5c   : > { %s1770_s29 = scalar_lea.vmem %s339_s23, 128  ;;  %s1865_s14 = smov [#allocation2]  }
  0x5d   : > { %p1771_p1 = scmp.ne.s32.totalorder %s339_s23, %s1770_s29  ;;  %s1775_s4 = sshll.u32 %s1865_s14, 4  ;;  %s1776_s4 = int_to_ptr.vmem [resolvable:$false] %s1775_s4 }
  0x5e   : > { %s1777_s5 = scalar_lea.vmem %s1776_s4, 256  ;;  %p1778_p9 = scmp.lt.s32.totalorder %s339_s23, %s1776_s4 }
  0x5f   : > { %p1773_p8 = pnand %p1771_p1, %p1759_p10  ;;  %p1779_p11 = scmp.lt.s32.totalorder %s1777_s5, %s1770_s29 }
  0x61   : > { %p1774_p5 = pneg %p1773_p8  ;;  %p1780_p6 = por %p1779_p11, %p1778_p9 }
  0x63   : > { %p1781_p3 = pnand %p1780_p6, %p1774_p5 }
  0x65   : > { %1784 = shalt.err (!%p1781_p3)
}
  0x66   : > { %1578 = dma.hbm_to_vmem [thread:$0]  (!%p2050_p7), %s2046_s27, 128, %s339_s23, %s328_s2  }
  0x67   : > { %p2270_p13 = scmp.ne.s32.totalorder %s2259_s16, 0 }
  0x68   : > { %s2071_s3 = sand.u32 (!%p2270_p13), 1, %s1849_s10   ;;  %p2271_p1 = scmp.ne.s32.totalorder (!%p2270_p13), %s2266_s13, 0 }
  0x69   : > { %347 = sbr.rel (%p2270_p13) target bundleno = 1536 (0x600), region = 56  ;;  %s1389_s22 = sshll.u32 (!%p2270_p13), %s2071_s3, 3 }
  0x6a   : > { %s350_s25 = scalar_lea.sflag (!%p2270_p13), [#allocation3], %s2071_s3  ;;  %s353_s4 = scalar_lea.vmem (!%p2270_p13), [#allocation2], %s1389_s22 }
  0x6e   : > { %1828 = dma.done.wait (%p2271_p1), %s350_s25, 128  }
  0x6f   : > { %1830 = vsyncadd (%p2271_p1), %s350_s25, 4294967168  ;;  %p2272_p3 = scmp.eq.s32.totalorder %s1940_s15, 0 }
  0x71   : > { %1832 = dma.done.wait (%p2272_p3), [#allocation6], 1024   ;;  %p2273_p4 = pmov %p2272_p3 }
  0x72   : > { %p2274_p6 = pmov %p2272_p3 }
  0x73   : > { %1834 = vsyncadd (%p2273_p4), [#allocation6], 4294966272 }
  0x74   : > { %1836 = dma.done.wait (%p2274_p6), [#allocation9], 528   ;;  %p2275_p5 = pmov %p2272_p3 }
  0x75   : > { %v1866_v0 = vmov 0.0   ;;  %vm1867_vm0 = vmmov 0   ;;  %v410_v1 = vld [vmem:[#allocation5 + $0x18] sm:$0xff]  ;;  %v409_v2 = vld [vmem:[#allocation5 + $0x10] sm:$0xff]  ;;  %v408_v4 = vld [vmem:[#allocation5 + $0x8] sm:$0xff]  ;;  %vm427_vm1 = vcmask 261120   ;;  %v645_v19 = vlaneseq }
  0x76   : > { %1838 = vsyncadd (%p2275_p5), [#allocation9], 4294966768  ;;  %1455 = vmatprep.subr.mxu0 %v1866_v0  ;;  %1463 = vmatprep.mubr.msk.f32.mxu0 %vm1867_vm0, %v1866_v0  ;;  %v2093_v3 = vld [vmem:[%s353_s4] sm:$0xff]  ;;  %v407_v6 = vld [vmem:[#allocation5] sm:$0xff]  ;;  %vm749_vm2 = vcmask 1043456   ;;  %vm723_vm3 = vcmask 31744  }
  0x77   : > { %1466 = vmatprep.subr.mxu1 %v1866_v0  ;;  %1474 = vmatprep.mubr.msk.f32.mxu1 %vm1867_vm0, %v1866_v0  ;;  %v414_v5 = vld [vmem:[#allocation7 + $0x18] sm:$0xff]  ;;  %v406_v7 = vld [vmem:[%s2242_s1 + $0x18] sm:$0xff]  ;;  %v405_v8 = vld [vmem:[%s2242_s1 + $0x10] sm:$0xff]  ;;  %v571_v11 = vrot.slane %v2093_v3, 4  ;;  %v646_v22 = vshrl.u32 %v645_v19, 7  ;;  %vm936_vm4 = vcmask 64512  }
  0x78   : > { %1456 = vmatpush3.msra.mxu0 %v410_v1  ;;  %904 = vxpose.xlu0.b32.start.end [1/1] (short) (narrow) %v2093_v3, 32  ;;  %v404_v9 = vld [vmem:[%s2242_s1 + $0x8] sm:$0xff]  ;;  %v403_v10 = vld [vmem:[%s2242_s1] sm:$0xff]  ;;  %v412_v13 = vld [vmem:[#allocation7 + $0x8] sm:$0xff]  ;;  %s1410_s23 = sshll.u32 %s1940_s15, 4  ;;  %s402_s24 = scalar_lea.vmem [#allocation11], %s2071_s3 }
  0x79   : > { %1457 = vmatprep.subr.mxu0 %v1866_v0  ;;  %1467 = vmatpush3.msra.mxu1 %v414_v5  ;;  %v413_v12 = vld [vmem:[#allocation7 + $0x10] sm:$0xff]  ;;  %v411_v14 = vld [vmem:[#allocation7] sm:$0xff]  ;;  %v424_v15 = vld [vmem:[%s2248_s7 + $0x18] sm:$0xff]  ;;  %v647_v23 = vsub.s32 0, %v646_v22  ;;  %s1275_s26 = sshll.u32 %s402_s24, 4  ;;  %vm1260_vm5 = vcmask 253952   ;;  %s2198_s29 = scalar_lea.hbm %s2250_s9, %s1410_s23  ;;  %s2200_s26 = int_to_ptr.vmem [resolvable:$true] %s1275_s26 }
  0x7a   : > { %1458 = vmatpush3.msra.mxu0 %v409_v2  ;;  %1468 = vmatprep.subr.mxu1 %v1866_v0  ;;  %v423_v16 = vld [vmem:[%s2248_s7 + $0x10] sm:$0xff]  ;;  %v422_v17 = vld [vmem:[%s2248_s7 + $0x8] sm:$0xff]  ;;  %v421_v18 = vld [vmem:[%s2248_s7] sm:$0xff]  ;;  %s1263_s14 = scalar_lea.sflag [#allocation4], %s2071_s3  ;;  %s1785_s22 = scalar_lea.vmem %s2200_s26, 16 }
  0x7b   : > { %1459 = vmatprep.subr.mxu0 %v1866_v0  ;;  %1469 = vmatpush3.msra.mxu1 %v413_v12  ;;  %v425_v31 = vld [vmem:[%s2249_s8] sm:$0xf]  ;;  %v418_v61 = vld [vmem:[#allocation8 + $0x18] sm:$0xff]  ;;  %v416_v63 = vld [vmem:[#allocation8 + $0x8] sm:$0xff]  ;;  %p1786_p8 = scmp.ne.s32.totalorder %s2200_s26, %s1785_s22  ;;  %p2276_p7 = scmp.ne.s32.totalorder %s2267_s17, 0 }
  0x7c   : > { %1460 = vmatpush3.msra.mxu0 %v408_v4  ;;  %1470 = vmatprep.subr.mxu1 %v1866_v0  ;;  %v420_v32 = vld [vmem:[%s2247_s6] sm:$0xff]  ;;  %v415_v1 = vld [vmem:[#allocation8] sm:$0xff]  ;;  %s1868_s15 = smov [#allocation11]  }
  0x7d   : > { %1461 = vmatprep.subr.mxu0 %v1866_v0  ;;  %1471 = vmatpush3.msra.mxu1 %v412_v13  ;;  %v417_v62 = vld [vmem:[#allocation8 + $0x10] sm:$0xff]  ;;  %p1787_p10 = pnand %p1786_p8, %p2276_p7  ;;  %s1789_s25 = sshll.u32 %s1868_s15, 4  ;;  %s1790_s25 = int_to_ptr.vmem [resolvable:$false] %s1789_s25 }
  0x7e   : > { %1462 = vmatpush3.msra.mxu0 %v407_v6  ;;  %1472 = vmatprep.subr.mxu1 %v1866_v0  ;;  %s1791_s4 = scalar_lea.vmem %s1790_s25, 32  ;;  %p1792_p12 = scmp.lt.s32.totalorder %s2200_s26, %s1790_s25 }
  0x7f   : > { %1464 = vmatmul.mubr.msk.f32.vlgmr.msra.gmra.mxu0 %vm427_vm1, %v2093_v3  ;;  %1477 = vmatprep.subr.mxu0 %v1866_v0  ;;  %p1788_p0 = pneg %p1787_p10  ;;  %p1793_p2 = scmp.lt.s32.totalorder %s1791_s4, %s1785_s22 }
  0x80   : > { %1478 = vmatpush3.msra.mxu0 %v406_v7  ;;  %1485 = vmatprep.mubr.msk.f32.mxu0 %vm1867_vm0, %v1866_v0 }
  0x81   : > { %1479 = vmatprep.subr.mxu0 %v1866_v0  ;;  %1473 = vmatpush3.msra.mxu1 %v411_v14  ;;  %p1794_p9 = por %p1793_p2, %p1792_p12 }
  0x82   : > { %1480 = vmatpush3.msra.mxu0 %v405_v8  ;;  %1475 = vmatmul.mubr.msk.f32.vlgmr.msra.gmra.mxu1 %vm427_vm1, %v2093_v3 }
  0x83   : > { %1481 = vmatprep.subr.mxu0 %v1866_v0  ;;  %1488 = vmatprep.subr.mxu1 %v1866_v0  ;;  %p1795_p11 = pnand %p1794_p9, %p1788_p0 }
  0x84   : > { %1482 = vmatpush3.msra.mxu0 %v404_v9  ;;  %1496 = vmatprep.mubr.msk.f32.mxu1 %vm1867_vm0, %v1866_v0 }
  0x85   : > { %1483 = vmatprep.subr.mxu0 %v1866_v0  ;;  %1489 = vmatpush3.msra.mxu1 %v424_v15 }
  0x86   : > { %1484 = vmatpush3.msra.mxu0 %v403_v10  ;;  %1490 = vmatprep.subr.mxu1 %v1866_v0 }
  0x87   : > { %1486 = vmatmul.mubr.msk.f32.vlgmr.msra.gmra.mxu0 %vm427_vm1, %v571_v11  ;;  %1499 = vmatprep.subr.mxu0 %v1866_v0 }
  0x88   : > { %1501 = vmatprep.mubr.msk.f32.mxu0 %vm1867_vm0, %v1866_v0  ;;  %1491 = vmatpush3.msra.mxu1 %v423_v16 }
  0x89   : > { %1492 = vmatprep.subr.mxu1 %v1866_v0  ;;  %1500 = vmatpush3.msk.msra.mxu0 %vm749_vm2, %v425_v31 }
  0x8a   : > { %1493 = vmatpush3.msra.mxu1 %v422_v17  ;;  %1515 = vmatprep.subr.mxu0 %v420_v32 }
  0x8b   : > { %1494 = vmatprep.subr.mxu1 %v1866_v0 }
  0x8c   : > { %1495 = vmatpush3.msra.mxu1 %v421_v18 }
  0x8d   : > { %1504 = vmatprep.subr.mxu1 %v1866_v0 }
  0xf4   : > { %v920_v52 = vpop.trf.xlu0 }
  0xf8   : > { %v921_v55 = vpop.trf.xlu0 }
  0xfc   : > { %v922_v59 = vpop.trf.xlu0 }
 0x100   : > { %v923_v60 = vpop.trf.xlu0 }
 0x13f   : > { %v497_v20 = vpop.f32.mrf.mxu0 }
 0x141   : > { %v1465_v21 = vpop.f32.mrf.mxu0 }
 0x142   : > { %v567_v29 = vpop.f32.mrf.mxu1 }
 0x144   : > { %v1476_v30 = vpop.f32.mrf.mxu1 }
 0x147   : > { %v640_v24 = vpop.f32.mrf.mxu0 }
 0x148   : > { %v644_v25 = vmul.f32 0.35355338, %v640_v24 }
 0x149   : > { %v1487_v26 = vpop.f32.mrf.mxu0 }
 0x14a   : > { %v648_v27 = vrot.slane %v644_v25, %v647_v23 }
 0x14c   : > { %v649_v28 = vmul.f32 %v648_v27, %v497_v20 }
 0x14e   : > { %1497 = vmatmul.mubr.msk.f32.vlgmr.msra.gmra.mxu1 %vm427_vm1, %v649_v28 }
 0x14f   : > { %1512 = vmatprep.mubr.msk.f32.mxu1 %vm1867_vm0, %v1866_v0  ;;  %1505 = vmatpush3.msra.mxu1 %v418_v61 }
 0x150   : > { %1506 = vmatprep.subr.mxu1 %v1866_v0 }
 0x151   : > { %1507 = vmatpush3.msra.mxu1 %v417_v62 }
 0x152   : > { %1508 = vmatprep.subr.mxu1 %v1866_v0 }
 0x153   : > { %1509 = vmatpush3.msra.mxu1 %v416_v63 }
 0x154   : > { %1510 = vmatprep.subr.mxu1 %v1866_v0 }
 0x155   : > { %1511 = vmatpush3.msra.mxu1 %v415_v1 }
 0x156   : > { %1523 = vmatprep.subr.mxu1 %v2093_v3 }
 0x20e   : > { %v719_v33 = vpop.f32.mrf.mxu1 }
 0x20f   : > { %v724_v34 = vsel %vm723_vm3, %v719_v33, -inf }
 0x210   : > { %v725_v35 = vrot.slane %v724_v34, 4  ;;  %v1498_v36 = vpop.f32.mrf.mxu1 }
 0x212   : > { %v726_v37 = vmax.f32 %v724_v34, %v725_v35 }
 0x214   : > { %v727_v38 = vrot.slane %v726_v37, 2 }
 0x216   : > { %v728_v39 = vmax.f32 %v726_v37, %v727_v38 }
 0x218   : > { %v729_v40 = vrot.slane %v728_v39, 1 }
 0x21a   : > { %v730_v41 = vmax.f32 %v728_v39, %v729_v40 }
 0x21c   : > { %v731_v42 = vsub.f32 %v719_v33, %v730_v41 }
 0x21e   : > { %v732_v43 = vmul.f32 1.442695, %v731_v42 }
 0x220   : > { %1633 = vpow2.f32 %v732_v43 }
 0x22d   : > { %v1634_v44 = vpop.eup %1633 }
 0x22e   : > { %v734_v45 = vsel %vm723_vm3, %v1634_v44, 0.0 }
 0x22f   : > { %v735_v46 = vrot.slane %v734_v45, 4 }
 0x231   : > { %v736_v47 = vadd.f32 %v735_v46, %v734_v45 }
 0x233   : > { %v737_v48 = vrot.slane %v736_v47, 2 }
 0x235   : > { %v738_v49 = vadd.f32 %v737_v48, %v736_v47 }
 0x237   : > { %v739_v50 = vrot.slane %v738_v49, 1 }
 0x239   : > { %v740_v51 = vadd.f32 %v739_v50, %v738_v49 }
 0x23b   : > { %1635 = vrcp.f32 %v740_v51 }
 0x248   : > { %v1636_v53 = vpop.eup %1635 }
 0x249   : > { %v742_v54 = vmul.f32 %v1636_v53, %v740_v51 }
 0x24b   : > { %v743_v56 = vsub.f32 2.0, %v742_v54 }
 0x24d   : > { %v744_v57 = vmul.f32 %v1636_v53, %v743_v56 }
 0x24f   : > { %v745_v58 = vmul.f32 %v1634_v44, %v744_v57 }
 0x251   : > { %1502 = vmatmul.mubr.msk.f32.vlgmr.msra.gmra.mxu0 %vm723_vm3, %v745_v58 }
 0x252   : > { %1517 = vmatprep.mubr.msk.f32.mxu0 %vm936_vm4, %v920_v52  ;;  %1516 = vmatpush3.msra.mxu0 %v420_v32 }
 0x253   : > { %1531 = vmatprep.subr.mxu0 %v1866_v0 }
 0x255   : > { %1518 = vmatmul.mubr.msk.f32.vlgmr.msra.gmra.mxu0 %vm936_vm4, %v921_v55 }
 0x256   : > { %1520 = vmatprep.mubr.msk.f32.mxu0 %vm936_vm4, %v922_v59 }
 0x259   : > { %1521 = vmatmul.mubr.msk.f32.gmra.mxu0 %vm936_vm4, %v923_v60 }
 0x25a   : > { %1539 = vmatprep.mubr.msk.f32.mxu0 %vm1867_vm0, %v1866_v0 }
 0x311   : > { %v819_v2 = vpop.f32.mrf.mxu0 }
 0x312   : > { %v823_v4 = vmul.f32 %v819_v2, %v567_v29 }
 0x313   : > { %v1503_v5 = vpop.f32.mrf.mxu0 }
 0x314   : > { %v824_v6 = vsel %vm427_vm1, %v823_v4, 0.0  ;;  %v419_v5 = vld [vmem:[#allocation10] sm:$0x1] }
 0x315   : > { %v825_v7 = vrot.slane %v824_v6, 4  ;;  %v1519_v10 = vpop.f32.mrf.mxu0 }
 0x317   : > { %v826_v8 = vadd.f32 %v825_v7, %v824_v6  ;;  %v1015_v13 = vpop.f32.mrf.mxu0 }
 0x319   : > { %v827_v9 = vrot.slane %v826_v8, 2  ;;  %v1522_v15 = vpop.f32.mrf.mxu0 }
 0x31b   : > { %v828_v11 = vadd.f32 %v827_v9, %v826_v8  ;;  %v1025_v16 = vpop.f32.mrf.mxu0 }
 0x31d   : > { %v829_v12 = vrot.slane %v828_v11, 1 }
 0x31f   : > { %v830_v14 = vadd.f32 %v829_v12, %v828_v11 }
 0x321   : > { %1513 = vmatmul.mubr.msk.f32.vlgmr.msra.gmra.mxu1 %vm427_vm1, %v830_v14 }
 0x322   : > { %1524 = vmatpush3.msra.mxu1 %v2093_v3  ;;  %1525 = vmatprep.mubr.msk.f32.mxu1 %vm936_vm4, %v1015_v13 }
 0x325   : > { %1526 = vmatmul.mubr.msk.f32.vlgmr.msra.gmra.mxu1 %vm936_vm4, %v1519_v10 }
 0x326   : > { %1528 = vmatprep.mubr.msk.f32.mxu1 %vm936_vm4, %v1025_v16 }
 0x329   : > { %1529 = vmatmul.mubr.msk.f32.gmra.mxu1 %vm936_vm4, %v1522_v15 }
 0x3e1   : > { %v2178_v17 = vpop.f32.mrf.mxu1 }
 0x3e2   : > { %v901_v9 = vadd.f32 %v2178_v17, %v419_v5 }
 0x3e3   : > { %v1514_v18 = vpop.f32.mrf.mxu1 }
 0x3e5   : > { %v1527_v19 = vpop.f32.mrf.mxu1 }
 0x3e6   : > { %v1134_v20 = vsel %vm427_vm1, %v1527_v19, -inf }
 0x3e7   : > { %1135 = vmax.xlane.f32.xlu1 %v1134_v20  ;;  %v1112_v21 = vpop.f32.mrf.mxu1 }
 0x3e8   : > { %v1131_v25 = vsel %vm427_vm1, %v1112_v21, -inf }
 0x3e9   : > { %v1530_v22 = vpop.f32.mrf.mxu1 }
 0x3ea   : > { %v1140_v3 = vsel %vm427_vm1, %v1530_v22, -inf }
 0x3eb   : > { %1141 = vmax.xlane.f32.xlu0 %v1140_v3  ;;  %v1122_v23 = vpop.f32.mrf.mxu1 }
 0x3ec   : > { %v1137_v24 = vsel %vm427_vm1, %v1122_v23, -inf }
 0x3ed   : > { %1138 = vmax.xlane.f32.xlu1 %v1137_v24 }
 0x3f1   : > { %1132 = vmax.xlane.f32.xlu1 %v1131_v25 }
 0x470   : > { %v1136_v26 = vpop.xlane.xlu1 %1135 }
 0x471   : > { %v1144_v27 = vsub.f32 %v1527_v19, %v1136_v26 }
 0x473   : > { %v1149_v28 = vmul.f32 1.442695, %v1144_v27 }
 0x474   : > { %v1142_v29 = vpop.xlane.xlu0 %1141 }
 0x475   : > { %1637 = vpow2.f32 %v1149_v28  ;;  %v1146_v30 = vsub.f32 %v1530_v22, %v1142_v29 }
 0x476   : > { %v1139_v31 = vpop.xlane.xlu1 %1138 }
 0x477   : > { %v1153_v32 = vmul.f32 1.442695, %v1146_v30  ;;  %v1145_v33 = vsub.f32 %v1122_v23, %v1139_v31 }
 0x479   : > { %1639 = vpow2.f32 %v1153_v32  ;;  %v1151_v34 = vmul.f32 1.442695, %v1145_v33 }
 0x47a   : > { %v1133_v35 = vpop.xlane.xlu1 %1132 }
 0x47b   : > { %1641 = vpow2.f32 %v1151_v34  ;;  %v1143_v36 = vsub.f32 %v1112_v21, %v1133_v35 }
 0x47d   : > { %v1147_v37 = vmul.f32 1.442695, %v1143_v36 }
 0x47f   : > { %1643 = vpow2.f32 %v1147_v37 }
 0x482   : > { %v1638_v38 = vpop.eup %1637 }
 0x483   : > { %v1158_v39 = vsel %vm427_vm1, %v1638_v38, 0.0 }
 0x484   : > { %1159 = vadd.xlane.f32.xlu1 %v1158_v39 }
 0x486   : > { %v1640_v40 = vpop.eup %1639 }
 0x487   : > { %v1164_v41 = vsel %vm427_vm1, %v1640_v40, 0.0 }
 0x488   : > { %v1642_v42 = vpop.eup %1641  ;;  %1165 = vadd.xlane.f32.xlu1 %v1164_v41 }
 0x489   : > { %v1161_v43 = vsel %vm427_vm1, %v1642_v42, 0.0 }
 0x48c   : > { %v1644_v44 = vpop.eup %1643  ;;  %1162 = vadd.xlane.f32.xlu1 %v1161_v43 }
 0x48d   : > { %v1155_v45 = vsel %vm427_vm1, %v1644_v44, 0.0 }
 0x490   : > { %1156 = vadd.xlane.f32.xlu1 %v1155_v45 }
 0x50d   : > { %v1160_v46 = vpop.xlane.xlu1 %1159 }
 0x50e   : > { %1645 = vrcp.f32 %v1160_v46 }
 0x511   : > { %v1166_v47 = vpop.xlane.xlu1 %1165 }
 0x512   : > { %1647 = vrcp.f32 %v1166_v47 }
 0x515   : > { %v1163_v48 = vpop.xlane.xlu1 %1162 }
 0x516   : > { %1649 = vrcp.f32 %v1163_v48 }
 0x519   : > { %v1157_v49 = vpop.xlane.xlu1 %1156 }
 0x51a   : > { %1651 = vrcp.f32 %v1157_v49 }
 0x51b   : > { %v1646_v50 = vpop.eup %1645 }
 0x51c   : > { %v1172_v52 = vmul.f32 %v1646_v50, %v1160_v46 }
 0x51e   : > { %v1176_v56 = vsub.f32 2.0, %v1172_v52 }
 0x51f   : > { %v1648_v51 = vpop.eup %1647 }
 0x520   : > { %v1174_v53 = vmul.f32 %v1648_v51, %v1166_v47  ;;  %v1180_v62 = vmul.f32 %v1646_v50, %v1176_v56 }
 0x522   : > { %v1178_v54 = vsub.f32 2.0, %v1174_v53  ;;  %v1184_v6 = vmul.f32 %v1638_v38, %v1180_v62 }
 0x523   : > { %v1650_v55 = vpop.eup %1649 }
 0x524   : > { %v1182_v57 = vmul.f32 %v1648_v51, %v1178_v54  ;;  %v1173_v58 = vmul.f32 %v1650_v55, %v1163_v48 }
 0x526   : > { %v1186_v59 = vmul.f32 %v1640_v40, %v1182_v57  ;;  %v1177_v60 = vsub.f32 2.0, %v1173_v58 }
 0x527   : > { %v1652_v61 = vpop.eup %1651 }
 0x528   : > { %v1181_v63 = vmul.f32 %v1650_v55, %v1177_v60  ;;  %v1171_v1 = vmul.f32 %v1652_v61, %v1157_v49  ;;  %1532 = vmatpush3.msra.mxu0 %v1186_v59 }
 0x529   : > { %1533 = vmatprep.subr.mxu0 %v1866_v0 }
 0x52a   : > { %v1185_v2 = vmul.f32 %v1642_v42, %v1181_v63  ;;  %v1175_v4 = vsub.f32 2.0, %v1171_v1 }
 0x52c   : > { %v1179_v7 = vmul.f32 %v1652_v61, %v1175_v4  ;;  %1534 = vmatpush3.msra.mxu0 %v1185_v2 }
 0x52d   : > { %1535 = vmatprep.subr.mxu0 %v1866_v0 }
 0x52e   : > { %v1183_v8 = vmul.f32 %v1644_v44, %v1179_v7  ;;  %1536 = vmatpush3.msra.mxu0 %v1184_v6 }
 0x52f   : > { %1537 = vmatprep.subr.mxu0 %v1866_v0 }
 0x530   : > { %1538 = vmatpush3.msra.mxu0 %v1183_v8 }
 0x531   : > { %1540 = vmatmul.mubr.msk.f32.vlgmr.msra.gmra.mxu0 %vm427_vm1, %v901_v9 }
 0x5f1   : > { %v1256_v10 = vpop.f32.mrf.mxu0 }
 0x5f2   : > { %1261 = vst.msk [vmem:[%s402_s24] sm:$0x1] %vm1260_vm5, %v1256_v10 }
 0x5f3   : > { %v1541_v0 = vpop.f32.mrf.mxu0 }
 0x5f4   : > { %1798 = shalt.err (!%p1795_p11)
}
 0x5f5   : > { %s1799_s2 = scalar_lea.hbm %s2198_s29, 16  ;;  %s1803_s16 = scalar_lea.hbm %s2250_s9, 32 }
 0x5f6   : > { %p1800_p13 = scmp.ne.s32.totalorder %s2198_s29, %s1799_s2  ;;  %p1804_p4 = scmp.lt.s32.totalorder %s2198_s29, %s2250_s9 }
 0x5f7   : > { %p1805_p6 = scmp.lt.s32.totalorder %s1803_s16, %s1799_s2 }
 0x5f8   : > { %p1801_p1 = pnand %p1800_p13, %p2276_p7 }
 0x5f9   : > { %p1806_p5 = por %p1805_p6, %p1804_p4 }
 0x5fa   : > { %p1802_p3 = pneg %p1801_p1 }
 0x5fc   : > { %p1807_p8 = pnand %p1806_p5, %p1802_p3 }
 0x5fe   : > { %1810 = shalt.err (!%p1807_p8)
}
 0x5ff   : > { %1560 = dma.vmem_to_hbm [thread:$0]  (%p2276_p7), %s2200_s26, 16, %s2198_s29, %s1263_s14  }
 0x600 PF: > { %s1287_s23 = sand.u32 1, %s1845_s30   ;;  %p2277_p10 = scmp.ne.s32.totalorder %s2268_s18, 0 }
 0x601   : > { %p2278_p0 = scmp.ge.s32.totalorder %s1857_s12, 2  ;;  %s1288_s24 = scalar_lea.sflag [#allocation4], %s1287_s23 }
 0x603   : > { %p1580_p12 = pnand %p2278_p0, %p2277_p10 }
 0x605   : > { %p1581_p2 = pneg %p1580_p12 }
 0x607   : > { %1840 = dma.done.wait (%p1581_p2), %s1288_s24, 16  }
 0x608   : > { %1842 = vsyncadd (%p1581_p2), %s1288_s24, 4294967280  ;;  %p24_p9 = scmp.ge.s32.totalorder %s2008_s19, 4   ;;  %s2279_s30 = smov %s1849_s10 }
 0x609   : > { %s2280_s10 = smov %s1853_s11  ;;  %s2281_s11 = smov %s2019_s28 }
 0x60a   : > { %s2282_s12 = smov %s2008_s19  ;;  %26 = sbr.rel (!%p24_p9) target bundleno = 12 (0xc), region = 117 }
 0x60f   :  { %1292 = vsyncpa [#allocation3], 1 }
 0x610   :  { %1294 = vsyncpa [#allocation3 + $0x1], 1 }
 0x611   :  { %1295 = vsyncpa [#allocation6], 1 }
 0x612   :  { %1296 = vsyncpa [#allocation9], 1 }
 0x613   :  { %1297 = vsyncpa [#allocation4], 1 }
 0x614   :  { %1299 = vsyncpa [#allocation4 + $0x1], 1 }

</bundles_post_ra>
